<compile_context>
chip_gen: v6e
topology: v6e:2x2x1
jax: 0.10.0
libtpu: 0.0.40
codegen_flags: <defaults>
</compile_context>

<pallas_src>
import math

import jax
import jax.numpy as jnp
from jax.experimental import pallas as pl
from jax.experimental.pallas import tpu as pltpu


def _sublane_pack(dtype) -> int:
    # 8 rows for 32-bit, 16 for bf16/fp16, 32 for 8-bit dtypes.
    return max(8, 32 // max(jnp.dtype(dtype).itemsize, 1))


def _lane_align(dim: int) -> int:
    # v6e/v7x MXU is 2x256x256: prefer 256-multiples when the dim is large
    # enough; otherwise stick to the 128-lane minimum.
    return 256 if dim >= 512 else 128


def _pick_tile(dim: int, want: int, align: int) -> int:
    """Largest tile <= min(want, dim) that is a multiple of `align`.

    If the whole dim fits under `align`, use the full dim (a block equal to
    the full array dim is always a legal BlockSpec shape). Never returns a
    tile larger than the array dim.
    """
    if dim <= align:
        return dim
    return max(align, (min(want, dim) // align) * align)


def _make_linear_kernel(*, has_bias, use_scratch, k_rem, tk, out_dtype,
                        precision):
    """Specialize the kernel on (bias?, scratch accumulator?, ragged K?)."""

    def kernel(*refs):
        pos = 0
        x_ref = refs[pos]; pos += 1          # (tm, tk)
        w_ref = refs[pos]; pos += 1          # (tk, tn)  -- (K, N) layout
        b_ref = None
        if has_bias:
            b_ref = refs[pos]; pos += 1      # (1, tn) float32
        o_ref = refs[pos]; pos += 1          # (tm, tn)
        acc_ref = refs[pos] if use_scratch else o_ref

        k = pl.program_id(2)
        nk = pl.num_programs(2)

        @pl.when(k == 0)
        def _():
            acc_ref[...] = jnp.zeros_like(acc_ref)

        x = x_ref[...]
        w = w_ref[...]
        if k_rem:
            # Ragged K tail: only the first `k_rem` K-elements of the last K
            # tile hold real data.  Zero the OOB K-columns of x *and* the OOB
            # K-rows of w so stale VMEM (possibly inf/nan) cannot contaminate
            # the reduction (0 * garbage is not guaranteed to be 0).
            valid = jnp.where(k == nk - 1, k_rem, tk)
            kcol = jax.lax.broadcasted_iota(jnp.int32, x.shape, 1)
            x = jnp.where(kcol < valid, x, jnp.zeros_like(x))
            krow = jax.lax.broadcasted_iota(jnp.int32, w.shape, 0)
            w = jnp.where(krow < valid, w, jnp.zeros_like(w))

        # Plain (m,k) x (k,n) contraction -> MXU, f32 accumulation.
        acc_ref[...] += jnp.dot(x, w, preferred_element_type=jnp.float32,
                                precision=precision)

        if has_bias or use_scratch:
            @pl.when(k == nk - 1)
            def _():
                acc = acc_ref[...]
                if has_bias:
                    acc = acc + b_ref[...]   # single f32 bias add
                o_ref[...] = acc.astype(out_dtype)

    return kernel


def linear_forward(x: jax.Array, weight: jax.Array, bias=None, *,
                   weight_is_transposed: bool = False,
                   compute_dtype=None,
                   precision=None,
                   tm: int | None = None,
                   tn: int | None = None,
                   tk: int | None = None) -> jax.Array:
    """Pallas implementation of `x @ weight.T (+ bias)`.

    x:      (*, in_features)
    weight: (out_features, in_features)         [PyTorch layout], or
            (in_features, out_features) if weight_is_transposed=True
            (pre-transpose once at parameter load to avoid a per-call pass).
    bias:   (out_features,) or None
    returns (*, out_features), dtype == x.dtype
    """
    *lead, K = x.shape
    if weight_is_transposed:
        K_w, N = weight.shape
        w_kn = weight
    else:
        N, K_w = weight.shape
        # One HBM transpose pass per call; prefer pre-transposing once.
        w_kn = weight.T
    assert K == K_w, "in_features mismatch"

    out_dtype = x.dtype
    M = 1
    for d in lead:
        M *= d

    # --- degenerate shapes: no kernel needed --------------------------------
    if M == 0 or N == 0:
        return jnp.zeros((*lead, N), dtype=out_dtype)
    if K == 0:
        out = jnp.zeros((M, N), dtype=jnp.float32)
        if bias is not None:
            out = out + bias.astype(jnp.float32)
        return out.astype(out_dtype).reshape(*lead, N)

    x2 = x.reshape(M, K)
    if compute_dtype is not None:
        x2 = x2.astype(compute_dtype)
        w_kn = w_kn.astype(compute_dtype)

    in_dtype = x2.dtype
    in_isz = jnp.dtype(in_dtype).itemsize
    out_isz = jnp.dtype(out_dtype).itemsize

    # --- tile selection ------------------------------------------------------
    if tm is None:
        tm = 512
    if tn is None:
        tn = 512 if in_isz >= 4 else 1024
    if tk is None:
        tk = 512 if in_isz >= 4 else 1024

    pack = max(_sublane_pack(in_dtype), _sublane_pack(out_dtype))
    tm = _pick_tile(M, tm, pack)
    tn = _pick_tile(N, tn, _lane_align(N))
    tk = _pick_tile(K, tk, _lane_align(K))

    grid_m, grid_n, grid_k = pl.cdiv(M, tm), pl.cdiv(N, tn), pl.cdiv(K, tk)

    # v7x has 2 TensorCores/chip: make sure the parallel axes expose >= 2
    # blocks when the shape allows it (harmless on v5e/v6e).
    if grid_m * grid_n == 1 and N >= 256:
        half_align = 256 if N >= 512 else 128
        tn = max(half_align, ((N // 2) // half_align) * half_align)
        grid_n = pl.cdiv(N, tn)

    grid = (grid_m, grid_n, grid_k)
    k_rem = K % tk
    has_bias = bias is not None
    use_scratch = out_dtype != jnp.float32   # f32 accumulates directly in o_ref

    # --- specs / operands ----------------------------------------------------
    x_spec = pl.BlockSpec((tm, tk), lambda i, j, k: (i, k))
    w_spec = pl.BlockSpec((tk, tn), lambda i, j, k: (k, j))
    o_spec = pl.BlockSpec((tm, tn), lambda i, j, k: (i, j))
    in_specs = [x_spec, w_spec]
    operands = [x2, w_kn]
    if has_bias:
        in_specs.append(pl.BlockSpec((1, tn), lambda i, j, k: (0, j)))
        operands.append(bias.astype(jnp.float32).reshape(1, N))

    scratch = [pltpu.VMEM((tm, tn), jnp.float32)] if use_scratch else []

    # VMEM budget: double-buffered x/w/out (+ bias) + optional f32 accumulator.
    vmem_needed = (2 * tm * tk * in_isz + 2 * tk * tn * in_isz
                   + 2 * tm * tn * out_isz
                   + (tm * tn * 4 if use_scratch else 0)
                   + (2 * tn * 4 if has_bias else 0))
    vmem_limit = int(min(max(vmem_needed * 5 // 4, 32 << 20), 128 << 20))

    cost = pl.CostEstimate(
        flops=2 * M * N * K,
        transcendentals=0,
        bytes_accessed=(grid_n * M * K * in_isz       # x re-streamed per N tile
                        + grid_m * K * N * in_isz     # w re-streamed per M tile
                        + M * N * out_isz             # output written once
                        + (N * 4 if has_bias else 0)))

    kernel = _make_linear_kernel(has_bias=has_bias, use_scratch=use_scratch,
                                 k_rem=k_rem, tk=tk, out_dtype=out_dtype,
                                 precision=precision)

    out = pl.pallas_call(
        kernel,
        out_shape=jax.ShapeDtypeStruct((M, N), out_dtype),
        grid_spec=pltpu.PrefetchScalarGridSpec(
            num_scalar_prefetch=0,
            grid=grid,
            in_specs=in_specs,
            out_specs=o_spec,
            scratch_shapes=scratch),
        compiler_params=pltpu.CompilerParams(
            dimension_semantics=("parallel", "parallel", "arbitrary"),
            vmem_limit_bytes=vmem_limit),
        cost_estimate=cost,
    )(*operands)

    return out.reshape(*lead, N)


def init_linear_params(key, in_features: int, out_features: int, bias: bool = True):
    """Matches the PyTorch module: uniform(-1/sqrt(in), 1/sqrt(in))."""
    bound = 1.0 / math.sqrt(in_features)
    kw, kb = jax.random.split(key)
    weight = jax.random.uniform(kw, (out_features, in_features),
                                minval=-bound, maxval=bound, dtype=jnp.float32)
    b = None
    if bias:
        b = jax.random.uniform(kb, (out_features,),
                               minval=-bound, maxval=bound, dtype=jnp.float32)
    return weight, b


if __name__ == "__main__":
    key = jax.random.PRNGKey(0)
    k_x, k_p, k_x2, k_p2 = jax.random.split(key, 4)

    # --- test 1: small shape consistent with the module (batch, seq, in) ----
    batch, seq, in_features, out_features = 2, 8, 32, 24
    x = jax.random.normal(k_x, (batch, seq, in_features), dtype=jnp.float32)
    weight, bias = init_linear_params(k_p, in_features, out_features, bias=True)

    y = linear_forward(x, weight, bias)
    y = jax.block_until_ready(y)
    y_ref = x @ weight.T + bias
    assert y.shape == (batch, seq, out_features)
    assert jnp.allclose(y, y_ref, atol=1e-5, rtol=1e-5)

    # --- test 2: ragged M/N/K (in-kernel K-tail masking, multi-step grid),
    #             no bias, pre-transposed (in, out) weight ---------------------
    b2_, s2_, in2_, out2_ = 3, 20, 200, 136
    x_b = jax.random.normal(k_x2, (b2_, s2_, in2_), dtype=jnp.float32)
    w_b, _ = init_linear_params(k_p2, in2_, out2_, bias=False)
    w_b_t = jnp.asarray(w_b.T)                # one-time layout prep, outside hot path
    y_b = linear_forward(x_b, w_b_t, None, weight_is_transposed=True,
                         tm=64, tn=128, tk=128)
    y_b = jax.block_until_ready(y_b)
    y_b_ref = x_b @ w_b.T
    assert y_b.shape == (b2_, s2_, out2_)
    assert jnp.allclose(y_b, y_b_ref, atol=2e-4, rtol=2e-4)

    # --- test 3: bf16 in/out (exercises f32 scratch accumulator + final cast)
    x_c = x.astype(jnp.bfloat16)
    w_c = weight.astype(jnp.bfloat16)
    y_c = linear_forward(x_c, w_c, bias)
    y_c = jax.block_until_ready(y_c)
    y_c_ref = x_c.astype(jnp.float32) @ w_c.astype(jnp.float32).T + bias
    assert y_c.dtype == jnp.bfloat16
    assert jnp.allclose(y_c.astype(jnp.float32), y_c_ref, atol=2e-2, rtol=2e-2)

    # --- test 4: empty batch guard -------------------------------------------
    x_e = jnp.zeros((0, in_features), dtype=jnp.float32)
    y_e = linear_forward(x_e, weight, bias)
    assert y_e.shape == (0, out_features)

    print("KERNEL_OK")
</pallas_src>

<mosaic_0001>
module attributes {stable_mosaic.version = 11 : i64} {
  func.func @kernel(%arg0: i32, %arg1: i32, %arg2: i32, %arg3: memref<16x32xf32, #tpu.memory_space<vmem>>, %arg4: memref<32x24xf32, #tpu.memory_space<vmem>>, %arg5: memref<1x24xf32, #tpu.memory_space<vmem>>, %arg6: memref<16x24xf32, #tpu.memory_space<vmem>>) attributes {dimension_semantics = [#tpu.dimension_semantics<parallel>, #tpu.dimension_semantics<parallel>, #tpu.dimension_semantics<arbitrary>], iteration_bounds = array<i64: 1, 1, 1>, scalar_prefetch = 0 : i64, scratch_operands = 0 : i64, tpu.core_type = #tpu.core_type<tc>, window_params = [{transform_indices = @transform_0, window_bounds = array<i64: 16, 32>}, {transform_indices = @transform_1, window_bounds = array<i64: 32, 24>}, {transform_indices = @transform_2, window_bounds = array<i64: 1, 24>}, {transform_indices = @transform_3, window_bounds = array<i64: 16, 24>}]} {
    %c0_i32 = arith.constant 0 : i32
    %0 = arith.cmpi eq, %arg2, %c0_i32 : i32
    %1 = arith.extui %0 : i1 to i32
    %c0_i32_0 = arith.constant 0 : i32
    %2 = arith.cmpi ne, %1, %c0_i32_0 : i32
    scf.if %2 {
      %cst_10 = arith.constant 0.000000e+00 : f32
      %12 = vector.broadcast %cst_10 : f32 to vector<16x24xf32>
      %c0_11 = arith.constant 0 : index
      %c0_12 = arith.constant 0 : index
      %13 = vector.load %arg6[%c0_11, %c0_12] : memref<16x24xf32, #tpu.memory_space<vmem>>, vector<16x24xf32>
      tpu.vector_store %arg6[%c0_11, %c0_12], %12 {strides = array<i32>} : memref<16x24xf32, #tpu.memory_space<vmem>>, vector<16x24xf32>,
    } else {
    }
    %c0 = arith.constant 0 : index
    %c0_1 = arith.constant 0 : index
    %3 = vector.load %arg3[%c0, %c0_1] : memref<16x32xf32, #tpu.memory_space<vmem>>, vector<16x32xf32>
    %c0_2 = arith.constant 0 : index
    %c0_3 = arith.constant 0 : index
    %4 = vector.load %arg4[%c0_2, %c0_3] : memref<32x24xf32, #tpu.memory_space<vmem>>, vector<32x24xf32>
    %c0_4 = arith.constant 0 : index
    %c0_5 = arith.constant 0 : index
    %5 = vector.load %arg6[%c0_4, %c0_5] : memref<16x24xf32, #tpu.memory_space<vmem>>, vector<16x24xf32>
    %cst = arith.constant dense<0.000000e+00> : vector<16x24xf32>
    %6 = tpu.matmul %3, %4, %cst {dimension_numbers = #tpu.dot_dimension_numbers<[1], [0], [0], [1], [0, 0, 1, 1], [], []>} : vector<16x32xf32>, vector<32x24xf32>, vector<16x24xf32> -> vector<16x24xf32>
    %7 = arith.addf %5, %6 : vector<16x24xf32>
    %c0_6 = arith.constant 0 : index
    %c0_7 = arith.constant 0 : index
    %8 = vector.load %arg6[%c0_6, %c0_7] : memref<16x24xf32, #tpu.memory_space<vmem>>, vector<16x24xf32>
    tpu.vector_store %arg6[%c0_6, %c0_7], %7 {strides = array<i32>} : memref<16x24xf32, #tpu.memory_space<vmem>>, vector<16x24xf32>,
    %c0_i32_8 = arith.constant 0 : i32
    %9 = arith.cmpi eq, %arg2, %c0_i32_8 : i32
    %10 = arith.extui %9 : i1 to i32
    %c0_i32_9 = arith.constant 0 : i32
    %11 = arith.cmpi ne, %10, %c0_i32_9 : i32
    scf.if %11 {
      %c0_10 = arith.constant 0 : index
      %c0_11 = arith.constant 0 : index
      %12 = vector.load %arg6[%c0_10, %c0_11] : memref<16x24xf32, #tpu.memory_space<vmem>>, vector<16x24xf32>
      %c0_12 = arith.constant 0 : index
      %c0_13 = arith.constant 0 : index
      %13 = vector.load %arg5[%c0_12, %c0_13] : memref<1x24xf32, #tpu.memory_space<vmem>>, vector<1x24xf32>
      %14 = vector.broadcast %13 : vector<1x24xf32> to vector<16x24xf32>
      %15 = arith.addf %12, %14 : vector<16x24xf32>
      %c0_14 = arith.constant 0 : index
      %c0_15 = arith.constant 0 : index
      %16 = vector.load %arg6[%c0_14, %c0_15] : memref<16x24xf32, #tpu.memory_space<vmem>>, vector<16x24xf32>
      tpu.vector_store %arg6[%c0_14, %c0_15], %15 {strides = array<i32>} : memref<16x24xf32, #tpu.memory_space<vmem>>, vector<16x24xf32>,
    } else {
    }
    return
  }
  func.func @transform_0(%arg0: i32, %arg1: i32, %arg2: i32) -> (i32, i32) {
    %c0_i32 = arith.constant 0 : i32
    return %arg0, %arg2 : i32, i32
  }
  func.func @transform_1(%arg0: i32, %arg1: i32, %arg2: i32) -> (i32, i32) {
    %c0_i32 = arith.constant 0 : i32
    return %arg2, %arg1 : i32, i32
  }
  func.func @transform_2(%arg0: i32, %arg1: i32, %arg2: i32) -> (i32, i32) {
    %c0_i32 = arith.constant 0 : i32
    %c0_i32_0 = arith.constant 0 : i32
    return %c0_i32, %arg1 : i32, i32
  }
  func.func @transform_3(%arg0: i32, %arg1: i32, %arg2: i32) -> (i32, i32) {
    %c0_i32 = arith.constant 0 : i32
    return %arg0, %arg1 : i32, i32
  }
}

</mosaic_0001>

<bundles_post_ra>
// kernel: tpu_custom_call.1
= control target key start
LH: loop header
LB: loop body
LE: loop exit
PB: predicated region body
PF: predicated region fallthrough
CT: control target
= control target key end

     0   :  { %vm30_vm0 = vcmask 261120   ;;  %vm19_vm1 = vcmask 195584   ;;  %v195_v3 = vmov 0.0   ;;  %s251_s0 = inlined_call_operand.vmem [shape: f32[16,32], index: 0, kind: input, shape index: {}]   ;;  %s252_s1 = inlined_call_operand.vmem [shape: f32[32,24], index: 1, kind: input, shape index: {}]   ;;  %s253_s2 = inlined_call_operand.vmem [shape: f32[1,24], index: 2, kind: input, shape index: {}]   ;;  %s254_s3 = inlined_call_operand.hbm [shape: f32[16,24], index: 3, kind: output, shape index: {}]  }
   0x1   :  { %v27_v0 = vld [vmem:[%s252_s1 + $0x18] sm:$0xff]  ;;  %v26_v1 = vld [vmem:[%s252_s1 + $0x10] sm:$0xff]  ;;  %v22_v2 = vld [vmem:[%s251_s0] sm:$0xff]  ;;  %21 = vst.msk [vmem:[#allocation2 + $0x8] sm:$0xff] %vm19_vm1, %v195_v3 }
   0x2   :  { %158 = vmatprep.subr.mxu0 %v27_v0  ;;  %20 = vst.msk [vmem:[#allocation2] sm:$0xff] %vm19_vm1, %v195_v3  ;;  %v25_v4 = vld [vmem:[%s252_s1 + $0x8] sm:$0xff]  ;;  %166 = vmatprep.mubr.msk.f32.mxu0 %vm30_vm0, %v22_v2 }
   0x3   :  { %159 = vmatpush3.msra.mxu0 %v27_v0 }
   0x4   :  { %8 = vsyncpa [#allocation3], 0  ;;  %160 = vmatprep.subr.mxu0 %v26_v1  ;;  %v24_v5 = vld [vmem:[%s252_s1] sm:$0xff]  ;;  %v23_v6 = vld [vmem:[%s251_s0 + $0x8] sm:$0xff]  ;;  %s196_s25 = smov [#allocation2]  }
   0x5   :  { %161 = vmatpush3.msra.mxu0 %v26_v1  ;;  %v151_v13 = vld [vmem:[%s253_s2] ss:$0 sm:$0xff]  ;;  %s138_s0 = sshll.u32 %s196_s25, 4  ;;  %s139_s0 = int_to_ptr.vmem [resolvable:$true] %s138_s0 }
   0x6   :  { %162 = vmatprep.subr.mxu0 %v25_v4  ;;  %s173_s26 = scalar_lea.vmem %s139_s0, 256  ;;  %p178_p1 = scmp.lt.s32.totalorder %s139_s0, %s139_s0 }
   0x7   :  { %163 = vmatpush3.msra.mxu0 %v25_v4  ;;  %p174_p0 = scmp.ne.s32.totalorder %s139_s0, %s173_s26  ;;  %p179_p2 = scmp.lt.s32.totalorder %s173_s26, %s173_s26 }
   0x8   :  { %164 = vmatprep.subr.mxu0 %v24_v5  ;;  %v29_v7 = vld [vmem:[#allocation2 + $0x8] sm:$0xff] }
   0x9   :  { %165 = vmatpush3.msra.mxu0 %v24_v5  ;;  %v28_v9 = vld [vmem:[#allocation2] sm:$0xff]  ;;  %p180_p3 = por %p179_p2, %p178_p1 }
   0xa   :  { %167 = vmatmul.mubr.msk.f32.vlgmr.msra.gmra.mxu0 %vm30_vm0, %v23_v6 }
   0xb   :  { %p181_p4 = pnand %p180_p3, %p174_p0 }
  0xca   :  { %v168_v8 = vpop.f32.mrf.mxu0 }
  0xcb   :  { %v113_v10 = vadd.f32 %v168_v8, %v29_v7 }
  0xcc   :  { %v103_v11 = vpop.f32.mrf.mxu0 }
  0xcd   :  { %116 = vst.msk [vmem:[#allocation2 + $0x8] sm:$0xff] %vm19_vm1, %v113_v10  ;;  %v112_v12 = vadd.f32 %v103_v11, %v28_v9 }
  0xcf   :  { %115 = vst.msk [vmem:[#allocation2] sm:$0xff] %vm19_vm1, %v112_v12 }
  0xd4   :  { %v121_v14 = vld [vmem:[#allocation2 + $0x8] sm:$0xff] }
  0xd5   :  { %v130_v15 = vadd.f32 %v151_v13, %v121_v14 }
  0xd6   :  { %v120_v16 = vld [vmem:[#allocation2] sm:$0xff] }
  0xd7   :  { %v129_v17 = vadd.f32 %v151_v13, %v120_v16  ;;  %132 = vst.msk [vmem:[#allocation2 + $0x8] sm:$0xff] %vm19_vm1, %v130_v15 }
  0xd9   :  { %131 = vst.msk [vmem:[#allocation2] sm:$0xff] %vm19_vm1, %v129_v17 }
  0xda   :  { %184 = shalt.err (!%p181_p4)
}
  0xdb   :  { %s197_s27 = smov 128   ;;  %s198_s2 = smov 8  }
  0xdc   :  { %144 = dma.vmem_to_hbm [thread:$0]  %s139_s0, 256, %s254_s3, [#allocation3], %s197_s27, %s197_s27, %s198_s2  }
  0xdd   :  { %193 = dma.done.wait [#allocation3], 256  }
  0xde   :  { %194 = vsyncadd [#allocation3], 4294967040 }
  0xdf   :  { %148 = vsyncpa [#allocation3], 1 }

</bundles_post_ra>
